<compile_context>
chip_gen: v7x
topology: tpu7x:2x2x1
jax: 0.10.0
libtpu: 0.0.40
codegen_flags: <defaults>
</compile_context>

<pallas_src>
import jax
import jax.numpy as jnp
from jax.experimental import pallas as pl
from jax.experimental.pallas import tpu as pltpu


def _round_up(n, m):
    return ((n + m - 1) // m) * m


def _choose_tile(B, tm_max):
    """Pick the batch tile TM (rows per grid step), always a multiple of 8."""
    tm_full = _round_up(B, 8)
    if tm_full <= tm_max and B < 512:
        # Tiny batch: a single grid step; per-step overhead is negligible.
        return tm_full
    # Enough work to care: aim for >= ~4 grid steps so v7x's two TensorCores
    # both get work and the DMA pipeline stays busy, but never exceed tm_max
    # (VMEM budget) and never go below the 8-row sublane multiple.
    tm = _round_up(pl.cdiv(B, 4), 8)
    return max(8, min(tm, tm_max))


def projection_kernel(x_ref, w_ref, b_ref, o_ref):
    # Hot path: matmul on the MXU (f32 accumulate) + bias broadcast-add on the VPU.
    acc = jnp.dot(x_ref[...], w_ref[...], preferred_element_type=jnp.float32)
    o_ref[...] = (acc + b_ref[...]).astype(o_ref.dtype)


def projection_head(x, w_t, b, *, tm_max=4096):
    """x: [B, E], w_t: [E, P] (transposed Linear weight), b: [P] -> [B, P].

    Batch is tiled with TM rows per grid step (ragged last block handled by
    Pallas); weight and bias stay VMEM-resident across all grid steps.
    """
    B, E = x.shape
    E2, P = w_t.shape
    assert E == E2, (E, E2)

    TM = _choose_tile(B, tm_max)
    grid = (pl.cdiv(B, TM),)

    b2d = b.reshape(1, P)  # single lane-dense (1, P) bias row, VMEM-resident

    # Honest scheduler hint: true B, weight/bias counted once (VMEM-resident).
    cost = pl.CostEstimate(
        flops=2 * B * E * P,
        transcendentals=0,
        bytes_accessed=(x.dtype.itemsize * B * E          # x read
                        + w_t.dtype.itemsize * E * P       # weight, once
                        + b.dtype.itemsize * P             # bias, once
                        + x.dtype.itemsize * B * P),       # output write
    )

    return pl.pallas_call(
        projection_kernel,
        out_shape=jax.ShapeDtypeStruct((B, P), x.dtype),
        grid_spec=pltpu.PrefetchScalarGridSpec(
            num_scalar_prefetch=0,
            grid=grid,
            in_specs=[
                pl.BlockSpec((TM, E), lambda i: (i, 0)),   # x tile, pipelined over B
                pl.BlockSpec((E, P), lambda i: (0, 0)),    # weight, VMEM-resident
                pl.BlockSpec((1, P), lambda i: (0, 0)),    # bias, VMEM-resident
            ],
            out_specs=pl.BlockSpec((TM, P), lambda i: (i, 0)),
        ),
        compiler_params=pltpu.CompilerParams(
            # Batch axis is data-parallel -> shards across v7x's 2 TensorCores.
            dimension_semantics=("parallel",),
        ),
        cost_estimate=cost,
    )(x, w_t, b2d)


if __name__ == "__main__":
    # Small shapes consistent with the module: embedding_dim=32, projection_dim=256.
    batch, embedding_dim, projection_dim = 8, 32, 256

    key = jax.random.PRNGKey(0)
    kx, kw, kb = jax.random.split(key, 3)

    # Deterministic parameter init mimicking nn.Linear's uniform(-1/sqrt(E), 1/sqrt(E)).
    bound = 1.0 / (embedding_dim ** 0.5)
    w = jax.random.uniform(kw, (projection_dim, embedding_dim),
                           minval=-bound, maxval=bound, dtype=jnp.float32)  # PyTorch [out, in]
    b = jax.random.uniform(kb, (projection_dim,),
                           minval=-bound, maxval=bound, dtype=jnp.float32)
    x = jax.random.normal(kx, (batch, embedding_dim), dtype=jnp.float32)

    w_t = w.T  # [E, P] for the kernel

    # 1) Small-batch path (single tile).
    y = jax.block_until_ready(projection_head(x, w_t, b))
    y_ref = x @ w_t + b
    assert y.shape == (batch, projection_dim)
    assert jnp.allclose(y, y_ref, atol=1e-5, rtol=1e-5)

    # 2) Multi-tile, ragged path: B=20 with tm_max=8 forces grid=3 with a
    #    partial final block and no host-side pad/slice.
    x2 = jax.random.normal(jax.random.PRNGKey(1), (20, embedding_dim), dtype=jnp.float32)
    y2 = jax.block_until_ready(projection_head(x2, w_t, b, tm_max=8))
    y2_ref = x2 @ w_t + b
    assert y2.shape == (20, projection_dim)
    assert jnp.allclose(y2, y2_ref, atol=1e-5, rtol=1e-5)

    print("KERNEL_OK")
</pallas_src>

<mosaic_0001>
module attributes {stable_mosaic.version = 11 : i64} {
  func.func @projection_kernel(%arg0: i32, %arg1: memref<8x32xf32, #tpu.memory_space<vmem>>, %arg2: memref<32x256xf32, #tpu.memory_space<vmem>>, %arg3: memref<1x256xf32, #tpu.memory_space<vmem>>, %arg4: memref<8x256xf32, #tpu.memory_space<vmem>>) attributes {dimension_semantics = [#tpu.dimension_semantics<parallel>], iteration_bounds = array<i64: 1>, scalar_prefetch = 0 : i64, scratch_operands = 0 : i64, tpu.core_type = #tpu.core_type<tc>, window_params = [{transform_indices = @transform_0, window_bounds = array<i64: 8, 32>}, {pipeline_mode = #tpu.pipeline_mode<synchronous>, transform_indices = @transform_1, window_bounds = array<i64: 32, 256>}, {pipeline_mode = #tpu.pipeline_mode<synchronous>, transform_indices = @transform_2, window_bounds = array<i64: 1, 256>}, {transform_indices = @transform_3, window_bounds = array<i64: 8, 256>}]} {
    %c0 = arith.constant 0 : index
    %c0_0 = arith.constant 0 : index
    %0 = vector.load %arg1[%c0, %c0_0] : memref<8x32xf32, #tpu.memory_space<vmem>>, vector<8x32xf32>
    %c0_1 = arith.constant 0 : index
    %c0_2 = arith.constant 0 : index
    %1 = vector.load %arg2[%c0_1, %c0_2] : memref<32x256xf32, #tpu.memory_space<vmem>>, vector<32x256xf32>
    %cst = arith.constant dense<0.000000e+00> : vector<8x256xf32>
    %2 = tpu.matmul %0, %1, %cst {dimension_numbers = #tpu.dot_dimension_numbers<[1], [0], [0], [1], [0, 0, 1, 1], [], []>} : vector<8x32xf32>, vector<32x256xf32>, vector<8x256xf32> -> vector<8x256xf32>
    %c0_3 = arith.constant 0 : index
    %c0_4 = arith.constant 0 : index
    %3 = vector.load %arg3[%c0_3, %c0_4] : memref<1x256xf32, #tpu.memory_space<vmem>>, vector<1x256xf32>
    %4 = vector.broadcast %3 : vector<1x256xf32> to vector<8x256xf32>
    %5 = arith.addf %2, %4 : vector<8x256xf32>
    %c0_5 = arith.constant 0 : index
    %c0_6 = arith.constant 0 : index
    %6 = vector.load %arg4[%c0_5, %c0_6] : memref<8x256xf32, #tpu.memory_space<vmem>>, vector<8x256xf32>
    tpu.vector_store %arg4[%c0_5, %c0_6], %5 {strides = array<i32>} : memref<8x256xf32, #tpu.memory_space<vmem>>, vector<8x256xf32>,
    return
  }
  func.func @transform_0(%arg0: i32) -> (i32, i32) {
    %c0_i32 = arith.constant 0 : i32
    %c0_i32_0 = arith.constant 0 : i32
    return %arg0, %c0_i32 : i32, i32
  }
  func.func @transform_1(%arg0: i32) -> (i32, i32) {
    %c0_i32 = arith.constant 0 : i32
    %c0_i32_0 = arith.constant 0 : i32
    %c0_i32_1 = arith.constant 0 : i32
    return %c0_i32, %c0_i32_0 : i32, i32
  }
  func.func @transform_2(%arg0: i32) -> (i32, i32) {
    %c0_i32 = arith.constant 0 : i32
    %c0_i32_0 = arith.constant 0 : i32
    %c0_i32_1 = arith.constant 0 : i32
    return %c0_i32, %c0_i32_0 : i32, i32
  }
  func.func @transform_3(%arg0: i32) -> (i32, i32) {
    %c0_i32 = arith.constant 0 : i32
    %c0_i32_0 = arith.constant 0 : i32
    return %arg0, %c0_i32 : i32, i32
  }
}

</mosaic_0001>

<bundles_post_ra>
// kernel: tpu_custom_call.1
= control target key start
LH: loop header
LB: loop body
LE: loop exit
PB: predicated region body
PF: predicated region fallthrough
CT: control target
= control target key end

     0   :  { %8 = vsyncpa [#allocation3], 0  ;;  %s314_s0 = inlined_call_operand.hbm [shape: f32[8,32], index: 0, kind: input, shape index: {}]   ;;  %s315_s1 = inlined_call_operand.hbm [shape: f32[32,256], index: 1, kind: input, shape index: {}]   ;;  %s316_s2 = inlined_call_operand.vmem [shape: f32[1,256], index: 2, kind: input, shape index: {}]   ;;  %s317_s3 = inlined_call_operand.hbm [shape: f32[8,256], index: 3, kind: output, shape index: {}]  }
   0x1   :  { %9 = vsyncpa [#allocation6], 0 }
   0x2   :  { %10 = vsyncpa [#allocation4], 0  ;;  %s242_s12 = smov [#allocation2]   ;;  %s243_s14 = smov [#allocation5]  }
   0x3   :  { %s17_s13 = sshll.u32 %s242_s12, 4  ;;  %s26_s15 = sshll.u32 %s243_s14, 4  ;;  %s18_s13 = int_to_ptr.vmem [resolvable:$true] %s17_s13  ;;  %s268_s15 = int_to_ptr.vmem [resolvable:$true] %s26_s15 }
   0x4   :  { %s170_s18 = scalar_lea.hbm %s314_s0, 128 }
   0x5   :  { %p171_p0 = scmp.ne.s32.totalorder %s314_s0, %s170_s18  ;;  %p174_p1 = scmp.lt.u32.totalorder %s170_s18, %s314_s0 }
   0x7   :  { %p176_p2 = pnand %p174_p1, %p171_p0 }
   0x9   :  { %179 = shalt.err (!%p176_p2)
}
   0xa   :  { %s180_s23 = scalar_lea.vmem %s18_s13, 128  ;;  %p185_p4 = scmp.lt.s32.totalorder %s18_s13, %s18_s13 }
   0xb   :  { %p181_p3 = scmp.ne.s32.totalorder %s18_s13, %s180_s23  ;;  %p186_p5 = scmp.lt.s32.totalorder %s180_s23, %s180_s23 }
   0xd   :  { %p187_p6 = por %p186_p5, %p185_p4 }
   0xf   :  { %p188_p7 = pnand %p187_p6, %p181_p3 }
  0x11   :  { %191 = shalt.err (!%p188_p7)
}
  0x12   :  { %20 = dma.hbm_to_vmem [thread:$0]  %s314_s0, 128, %s18_s13, [#allocation3]  }
  0x13   :  { %s192_s28 = scalar_lea.hbm %s315_s1, 1024 }
  0x14   :  { %p193_p8 = scmp.ne.s32.totalorder %s315_s1, %s192_s28  ;;  %p196_p9 = scmp.lt.u32.totalorder %s192_s28, %s315_s1 }
  0x16   :  { %p198_p10 = pnand %p196_p9, %p193_p8 }
  0x18   :  { %201 = shalt.err (!%p198_p10)
}
  0x19   :  { %s202_s6 = scalar_lea.vmem %s268_s15, 1024  ;;  %p207_p12 = scmp.lt.s32.totalorder %s268_s15, %s268_s15 }
  0x1a   :  { %p203_p11 = scmp.ne.s32.totalorder %s268_s15, %s202_s6  ;;  %p208_p13 = scmp.lt.s32.totalorder %s202_s6, %s202_s6 }
  0x1c   :  { %p209_p0 = por %p208_p13, %p207_p12 }
  0x1e   :  { %p210_p1 = pnand %p209_p0, %p203_p11 }
  0x20   :  { %213 = shalt.err (!%p210_p1)
}
  0x21   :  { %s244_s0 = smov 256   ;;  %s245_s7 = smov 16  }
  0x22   :  { %32 = dma.hbm_to_vmem [thread:$0]  %s315_s1, 1024, %s268_s15, [#allocation6], %s244_s0, %s244_s0, %s245_s7  }
  0x23   :  { %236 = dma.done.wait [#allocation3], 128  }
  0x24   :  { %237 = vsyncadd [#allocation3], 4294967168 }
  0x25   :  { %238 = dma.done.wait [#allocation6], 1024  }
  0x26   :  { %239 = vsyncadd [#allocation6], 4294966272  ;;  %v246_v0 = vmov 0.0   ;;  %v43_v1 = vld [vmem:[#allocation5 + $0x8] sm:$0xff]  ;;  %v45_v2 = vld [vmem:[#allocation5 + $0x18] sm:$0xff]  ;;  %vm62_vm0 = vcmask 261120   ;;  %v52_v14 = vlaneseq }
  0x27   :  { %130 = vmatprep.mubr.f32.mxu0 %v246_v0  ;;  %v42_v3 = vld [vmem:[#allocation5] sm:$0xff]  ;;  %v156_v4 = vpack.c.bf16 %v45_v2, %v43_v1  ;;  %v44_v5 = vld [vmem:[#allocation5 + $0x10] sm:$0xff]  ;;  %v47_v6 = vld [vmem:[#allocation5 + $0x28] sm:$0xff]  ;;  %s247_s11 = smov [#allocation7]  }
  0x28   :  { %v49_v7 = vld [vmem:[#allocation5 + $0x38] sm:$0xff]  ;;  %v158_v8 = vpack.c.bf16 %v44_v5, %v42_v3  ;;  %v46_v10 = vld [vmem:[#allocation5 + $0x20] sm:$0xff]  ;;  %v48_v11 = vld [vmem:[#allocation5 + $0x30] sm:$0xff]  ;;  %v53_v15 = vshrl.u32 %v52_v14, 7  ;;  %s145_s12 = sshll.u32 %s247_s11, 4  ;;  %s146_s12 = int_to_ptr.vmem [resolvable:$true] %s145_s12 }
  0x29   :  { %v160_v9 = vpack.c.bf16 %v49_v7, %v47_v6  ;;  %157 = vmatprep.subr.bf16.mxu0 %v156_v4  ;;  %v162_v12 = vpack.c.bf16 %v48_v11, %v46_v10  ;;  %v41_v13 = vld [vmem:[#allocation2] sm:$0xff]  ;;  %s214_s13 = scalar_lea.vmem %s146_s12, 256  ;;  %p219_p3 = scmp.lt.s32.totalorder %s146_s12, %s146_s12 }
  0x2a   :  { %159 = vmatpush1.bf16.msra.mxu0 %v158_v8  ;;  %v54_v16 = vsub.s32 0, %v53_v15  ;;  %v50_v17 = vld [vmem:[%s316_s2] sm:$0x3]  ;;  %v58_v18 = vsub.s32 1, %v53_v15  ;;  %p215_p2 = scmp.ne.s32.totalorder %s146_s12, %s214_s13  ;;  %p220_p4 = scmp.lt.s32.totalorder %s214_s13, %s214_s13 }
  0x2b   :  { %161 = vmatprep.subr.bf16.mxu0 %v160_v9 }
  0x2c   :  { %v55_v19 = vrot.slane %v50_v17, %v54_v16  ;;  %v59_v20 = vrot.slane %v50_v17, %v58_v18  ;;  %p221_p5 = por %p220_p4, %p219_p3 }
  0x2e   :  { %163 = vmatpush1.bf16.msra.mxu0 %v162_v12  ;;  %p222_p6 = pnand %p221_p5, %p215_p2 }
  0x31   :  { %155 = vmatmul.mubr.msk.f32.vlgmr.msra.gmra.mrb[0].mxu0 %vm62_vm0, %v41_v13 }
 0x104   :  { %v132_v21 = vpop.f32.mrb[0].mxu0 }
 0x105   :  { %v133_v22 = vadd.f32 %v132_v21, %v55_v19  ;;  %v134_v23 = vpop.f32.mrb[1].mxu0 }
 0x106   :  { %v135_v24 = vadd.f32 %v134_v23, %v59_v20 }
 0x107   :  { %137 = vst [vmem:[#allocation7] sm:$0xff] %v133_v22 }
 0x108   :  { %138 = vst [vmem:[#allocation7 + $0x8] sm:$0xff] %v135_v24 }
 0x109   :  { %225 = shalt.err (!%p222_p6)
}
 0x10a   :  { %s226_s15 = scalar_lea.hbm %s317_s3, 256 }
 0x10b   :  { %p227_p7 = scmp.ne.s32.totalorder %s317_s3, %s226_s15  ;;  %p230_p8 = scmp.lt.u32.totalorder %s226_s15, %s317_s3 }
 0x10d   :  { %p232_p9 = pnand %p230_p8, %p227_p7 }
 0x10f   :  { %235 = shalt.err (!%p232_p9)
}
 0x110   :  { %148 = dma.vmem_to_hbm [thread:$0]  %s146_s12, 256, %s317_s3, [#allocation4]  }
 0x111   :  { %240 = dma.done.wait [#allocation4], 256  }
 0x112   :  { %241 = vsyncadd [#allocation4], 4294967040 }
 0x113   :  { %152 = vsyncpa [#allocation3], 1 }
 0x114   :  { %153 = vsyncpa [#allocation6], 1 }
 0x115   :  { %154 = vsyncpa [#allocation4], 1 }

</bundles_post_ra>
